<compile_context>
chip_gen: v7x
topology: tpu7x:2x2x1
jax: 0.10.0
libtpu: 0.0.40
codegen_flags: <defaults>
</compile_context>

<pallas_src>
import jax
import jax.numpy as jnp
from jax import lax
from jax.experimental import pallas as pl
from jax.experimental.pallas import tpu as pltpu

MESSAGE_SIZE = 32


def _vanilla_gnn_kernel(nf_ref, idx0c_ref, idx1c_ref, idx0r_ref, ef_ref,
                        we0_ref, we1_ref, we2_ref, be_ref,
                        wn0_ref, wn1_ref, bn_ref,
                        out_ref,
                        p01_ref, acc_ref):
    step = pl.program_id(0)
    n_nodes = nf_ref.shape[0]
    te = idx0c_ref.shape[0]

    # ---- step 0: project node features through the edge-weight slices once,
    #      and zero the scatter accumulator.
    @pl.when(step == 0)
    def _init():
        nf = nf_ref[...]
        p01_ref[0:n_nodes, :] = jnp.dot(nf, we0_ref[...],
                                        preferred_element_type=jnp.float32)
        p01_ref[n_nodes:2 * n_nodes, :] = jnp.dot(nf, we1_ref[...],
                                                  preferred_element_type=jnp.float32)
        acc_ref[...] = jnp.zeros_like(acc_ref)

    idx0 = idx0c_ref[...]                                    # [TE, 1] i32
    idx1 = idx1c_ref[...]                                    # [TE, 1] i32

    # ---- fused gather: one-hot [TE, 2N]; cols < N match idx0, cols >= N match idx1.
    #      (padded edges use idx0 = -1, idx1 = -(N+1) -> match nothing)
    iota2n = lax.broadcasted_iota(jnp.int32, (te, 2 * n_nodes), 1)
    onehot01 = jnp.logical_or(iota2n == idx0,
                              iota2n == idx1 + n_nodes).astype(jnp.float32)

    # Edge MLP: ReLU(p0[idx0] + p1[idx1] + ef @ we2 + be)  (concat folded away).
    msg = (jnp.dot(onehot01, p01_ref[...], preferred_element_type=jnp.float32)
           + jnp.dot(ef_ref[...], we2_ref[...], preferred_element_type=jnp.float32)
           + be_ref[...])
    msg = jnp.maximum(msg, 0.0)                              # [TE, M]

    # ---- scatter_sum over node0: transposed one-hot [N, TE] built directly
    #      (idx0 in row layout -> no relayout/transpose through the XLU).
    iota_n = lax.broadcasted_iota(jnp.int32, (n_nodes, te), 0)
    onehot0_t = (idx0r_ref[...] == iota_n).astype(jnp.float32)
    acc_ref[...] += jnp.dot(onehot0_t, msg, preferred_element_type=jnp.float32)

    # ---- last step: node MLP (concat folded into split weights) and write out.
    @pl.when(step == pl.num_programs(0) - 1)
    def _finalize():
        out = (jnp.dot(nf_ref[...], wn0_ref[...], preferred_element_type=jnp.float32)
               + jnp.dot(acc_ref[...], wn1_ref[...], preferred_element_type=jnp.float32)
               + bn_ref[...])
        out_ref[...] = jnp.maximum(out, 0.0)


def vanilla_convolutional_layer(node_features, edge_node_indices, edge_features,
                                params, *, edge_tile=256):
    """Pallas port of VanillaConvolutionalLayer.forward."""
    node_features = node_features.astype(jnp.float32)
    edge_features = edge_features.astype(jnp.float32)
    N, fn = node_features.shape
    E, fe = edge_features.shape
    we, be, wn, bn = params["we"], params["be"], params["wn"], params["bn"]
    M = be.shape[0]

    # torch Linear stores W as [out, in]; transpose to [in, out] and split the
    # input axis so the torch.cat's become independent partial matmuls.
    we_t = we.T.astype(jnp.float32)                  # [2*fn + fe, M]
    we0, we1, we2 = we_t[:fn], we_t[fn:2 * fn], we_t[2 * fn:]
    wn_t = wn.T.astype(jnp.float32)                  # [fn + M, fn]
    wn0, wn1 = wn_t[:fn], wn_t[fn:]

    te = edge_tile
    n_steps = pl.cdiv(E, te)
    e_pad = n_steps * te
    pad = e_pad - E

    idx0 = edge_node_indices[0].astype(jnp.int32)
    idx1 = edge_node_indices[1].astype(jnp.int32)
    if pad:
        # Padded edges match no one-hot column/row -> they contribute nothing.
        idx0 = jnp.concatenate([idx0, jnp.full((pad,), -1, jnp.int32)])
        idx1 = jnp.concatenate([idx1, jnp.full((pad,), -(N + 1), jnp.int32)])
        edge_features = jnp.concatenate(
            [edge_features, jnp.zeros((pad, fe), jnp.float32)])

    idx0_col = idx0.reshape(e_pad, 1)
    idx1_col = idx1.reshape(e_pad, 1)
    idx0_row = idx0.reshape(1, e_pad)

    flops = (2 * e_pad * (2 * N) * M          # fused one-hot gather matmul
             + 2 * e_pad * fe * M             # edge-feature partial matmul
             + 2 * e_pad * N * M              # scatter matmul
             + 2 * N * fn * 2 * M             # p0/p1 projections (once)
             + 2 * N * (fn + M) * fn)         # node MLP (once)
    bytes_accessed = 4 * (N * fn + 3 * e_pad + e_pad * fe
                          + we_t.size + M + wn_t.size + fn + N * fn)

    grid_spec = pltpu.PrefetchScalarGridSpec(
        num_scalar_prefetch=0,
        grid=(n_steps,),
        in_specs=[
            pl.BlockSpec((N, fn), lambda e: (0, 0)),     # node features (resident)
            pl.BlockSpec((te, 1), lambda e: (e, 0)),     # idx0 (column layout)
            pl.BlockSpec((te, 1), lambda e: (e, 0)),     # idx1 (column layout)
            pl.BlockSpec((1, te), lambda e: (0, e)),     # idx0 (row layout, scatter)
            pl.BlockSpec((te, fe), lambda e: (e, 0)),    # edge features
            pl.BlockSpec((fn, M), lambda e: (0, 0)),     # we0
            pl.BlockSpec((fn, M), lambda e: (0, 0)),     # we1
            pl.BlockSpec((fe, M), lambda e: (0, 0)),     # we2
            pl.BlockSpec((1, M), lambda e: (0, 0)),      # be
            pl.BlockSpec((fn, fn), lambda e: (0, 0)),    # wn0
            pl.BlockSpec((M, fn), lambda e: (0, 0)),     # wn1
            pl.BlockSpec((1, fn), lambda e: (0, 0)),     # bn
        ],
        out_specs=pl.BlockSpec((N, fn), lambda e: (0, 0)),
        scratch_shapes=[
            pltpu.VMEM((2 * N, M), jnp.float32),         # stacked p0/p1 projections
            pltpu.VMEM((N, M), jnp.float32),             # message-sum accumulator
        ],
    )

    return pl.pallas_call(
        _vanilla_gnn_kernel,
        out_shape=jax.ShapeDtypeStruct((N, fn), jnp.float32),
        grid_spec=grid_spec,
        compiler_params=pltpu.CompilerParams(
            dimension_semantics=("arbitrary",),          # edge axis is a reduction
            vmem_limit_bytes=32 * 1024 * 1024,           # safe on v5e/v6e/v7x
        ),
        cost_estimate=pl.CostEstimate(flops=flops, transcendentals=0,
                                      bytes_accessed=bytes_accessed),
    )(node_features, idx0_col, idx1_col, idx0_row, edge_features,
      we0, we1, we2, be.reshape(1, -1).astype(jnp.float32),
      wn0, wn1, bn.reshape(1, -1).astype(jnp.float32))


def reference_forward(node_features, edge_node_indices, edge_features, params):
    """Pure-JAX reference matching the PyTorch module semantics."""
    idx0, idx1 = edge_node_indices[0], edge_node_indices[1]
    n0 = node_features[idx0]
    n1 = node_features[idx1]
    msg_in = jnp.concatenate([n0, n1, edge_features], axis=1)
    msg = jax.nn.relu(msg_in @ params["we"].T + params["be"])
    sums = jnp.zeros((node_features.shape[0], msg.shape[1]), jnp.float32).at[idx0].add(msg)
    node_in = jnp.concatenate([node_features, sums], axis=1)
    return jax.nn.relu(node_in @ params["wn"].T + params["bn"])


def init_params(key, count_node_features, count_edge_features):
    """Deterministic init mimicking nn.Linear default U(-1/sqrt(fan_in), 1/sqrt(fan_in))."""
    edge_in = 2 * count_node_features + count_edge_features
    node_in = count_node_features + MESSAGE_SIZE
    k1, k2, k3, k4 = jax.random.split(key, 4)
    be_bound = 1.0 / jnp.sqrt(edge_in)
    bn_bound = 1.0 / jnp.sqrt(node_in)
    return {
        "we": jax.random.uniform(k1, (MESSAGE_SIZE, edge_in), jnp.float32, -be_bound, be_bound),
        "be": jax.random.uniform(k2, (MESSAGE_SIZE,), jnp.float32, -be_bound, be_bound),
        "wn": jax.random.uniform(k3, (count_node_features, node_in), jnp.float32, -bn_bound, bn_bound),
        "bn": jax.random.uniform(k4, (count_node_features,), jnp.float32, -bn_bound, bn_bound),
    }


if __name__ == "__main__":
    count_node_features = 8
    count_edge_features = 4
    num_nodes = 64
    num_edges = 300          # not a multiple of the 128 edge tile -> exercises padding

    key = jax.random.PRNGKey(0)
    k_nf, k_ef, k_i0, k_i1, k_p = jax.random.split(key, 5)

    node_features = jax.random.normal(k_nf, (num_nodes, count_node_features), jnp.float32)
    edge_features = jax.random.normal(k_ef, (num_edges, count_edge_features), jnp.float32)
    edge_node_indices = jnp.stack([
        jax.random.randint(k_i0, (num_edges,), 0, num_nodes, jnp.int32),
        jax.random.randint(k_i1, (num_edges,), 0, num_nodes, jnp.int32),
    ], axis=0)                                # [2, E]

    params = init_params(k_p, count_node_features, count_edge_features)

    # Multi-step grid with padding (300 edges, tile 128 -> 3 steps, 84 padded edges).
    out = vanilla_convolutional_layer(node_features, edge_node_indices, edge_features,
                                      params, edge_tile=128)
    out = jax.block_until_ready(out)

    ref = reference_forward(node_features, edge_node_indices, edge_features, params)
    assert out.shape == (num_nodes, count_node_features)
    assert jnp.allclose(out, ref, atol=1e-4, rtol=1e-4), "mismatch vs JAX reference"

    # Also exercise the single-step path (whole edge set in one tile).
    out2 = jax.block_until_ready(
        vanilla_convolutional_layer(node_features, edge_node_indices, edge_features,
                                    params, edge_tile=512))
    assert jnp.allclose(out2, ref, atol=1e-4, rtol=1e-4), "mismatch (single-tile) vs JAX reference"

    print("KERNEL_OK")
</pallas_src>

<mosaic_0001>
module attributes {stable_mosaic.version = 11 : i64} {
  func.func @_vanilla_gnn_kernel(%arg0: i32, %arg1: memref<64x8xf32, #tpu.memory_space<vmem>>, %arg2: memref<128x1xi32, #tpu.memory_space<vmem>>, %arg3: memref<128x1xi32, #tpu.memory_space<vmem>>, %arg4: memref<1x128xi32, #tpu.memory_space<vmem>>, %arg5: memref<128x4xf32, #tpu.memory_space<vmem>>, %arg6: memref<8x32xf32, #tpu.memory_space<vmem>>, %arg7: memref<8x32xf32, #tpu.memory_space<vmem>>, %arg8: memref<4x32xf32, #tpu.memory_space<vmem>>, %arg9: memref<1x32xf32, #tpu.memory_space<vmem>>, %arg10: memref<8x8xf32, #tpu.memory_space<vmem>>, %arg11: memref<32x8xf32, #tpu.memory_space<vmem>>, %arg12: memref<1x8xf32, #tpu.memory_space<vmem>>, %arg13: memref<64x8xf32, #tpu.memory_space<vmem>>, %arg14: memref<128x32xf32, #tpu.memory_space<vmem>>, %arg15: memref<64x32xf32, #tpu.memory_space<vmem>>) attributes {dimension_semantics = [#tpu.dimension_semantics<arbitrary>], iteration_bounds = array<i64: 3>, scalar_prefetch = 0 : i64, scratch_operands = 2 : i64, tpu.core_type = #tpu.core_type<tc>, window_params = [{pipeline_mode = #tpu.pipeline_mode<synchronous>, transform_indices = @transform_0, window_bounds = array<i64: 64, 8>}, {transform_indices = @transform_1, window_bounds = array<i64: 128, 1>}, {transform_indices = @transform_2, window_bounds = array<i64: 128, 1>}, {transform_indices = @transform_3, window_bounds = array<i64: 1, 128>}, {transform_indices = @transform_4, window_bounds = array<i64: 128, 4>}, {pipeline_mode = #tpu.pipeline_mode<synchronous>, transform_indices = @transform_5, window_bounds = array<i64: 8, 32>}, {pipeline_mode = #tpu.pipeline_mode<synchronous>, transform_indices = @transform_6, window_bounds = array<i64: 8, 32>}, {pipeline_mode = #tpu.pipeline_mode<synchronous>, transform_indices = @transform_7, window_bounds = array<i64: 4, 32>}, {pipeline_mode = #tpu.pipeline_mode<synchronous>, transform_indices = @transform_8, window_bounds = array<i64: 1, 32>}, {pipeline_mode = #tpu.pipeline_mode<synchronous>, transform_indices = @transform_9, window_bounds = array<i64: 8, 8>}, {pipeline_mode = #tpu.pipeline_mode<synchronous>, transform_indices = @transform_10, window_bounds = array<i64: 32, 8>}, {pipeline_mode = #tpu.pipeline_mode<synchronous>, transform_indices = @transform_11, window_bounds = array<i64: 1, 8>}, {pipeline_mode = #tpu.pipeline_mode<synchronous>, transform_indices = @transform_12, window_bounds = array<i64: 64, 8>}]} {
    %c0_i32 = arith.constant 0 : i32
    %0 = arith.cmpi eq, %arg0, %c0_i32 : i32
    %1 = arith.extui %0 : i1 to i32
    %c0_i32_0 = arith.constant 0 : i32
    %2 = arith.cmpi ne, %1, %c0_i32_0 : i32
    scf.if %2 {
      %c0_22 = arith.constant 0 : index
      %c0_23 = arith.constant 0 : index
      %39 = vector.load %arg1[%c0_22, %c0_23] : memref<64x8xf32, #tpu.memory_space<vmem>>, vector<64x8xf32>
      %c0_24 = arith.constant 0 : index
      %c0_25 = arith.constant 0 : index
      %40 = vector.load %arg6[%c0_24, %c0_25] : memref<8x32xf32, #tpu.memory_space<vmem>>, vector<8x32xf32>
      %cst_26 = arith.constant dense<0.000000e+00> : vector<64x32xf32>
      %41 = tpu.matmul %39, %40, %cst_26 {dimension_numbers = #tpu.dot_dimension_numbers<[1], [0], [0], [1], [0, 0, 1, 1], [], []>} : vector<64x8xf32>, vector<8x32xf32>, vector<64x32xf32> -> vector<64x32xf32>
      %c0_27 = arith.constant 0 : index
      %c0_28 = arith.constant 0 : index
      %42 = vector.load %arg14[%c0_27, %c0_28] : memref<128x32xf32, #tpu.memory_space<vmem>>, vector<64x32xf32>
      tpu.vector_store %arg14[%c0_27, %c0_28], %41 {strides = array<i32>} : memref<128x32xf32, #tpu.memory_space<vmem>>, vector<64x32xf32>,
      %c0_29 = arith.constant 0 : index
      %c0_30 = arith.constant 0 : index
      %43 = vector.load %arg7[%c0_29, %c0_30] : memref<8x32xf32, #tpu.memory_space<vmem>>, vector<8x32xf32>
      %cst_31 = arith.constant dense<0.000000e+00> : vector<64x32xf32>
      %44 = tpu.matmul %39, %43, %cst_31 {dimension_numbers = #tpu.dot_dimension_numbers<[1], [0], [0], [1], [0, 0, 1, 1], [], []>} : vector<64x8xf32>, vector<8x32xf32>, vector<64x32xf32> -> vector<64x32xf32>
      %c64 = arith.constant 64 : index
      %c0_32 = arith.constant 0 : index
      %45 = vector.load %arg14[%c64, %c0_32] : memref<128x32xf32, #tpu.memory_space<vmem>>, vector<64x32xf32>
      tpu.vector_store %arg14[%c64, %c0_32], %44 {strides = array<i32>} : memref<128x32xf32, #tpu.memory_space<vmem>>, vector<64x32xf32>,
      %cst_33 = arith.constant 0.000000e+00 : f32
      %46 = vector.broadcast %cst_33 : f32 to vector<64x32xf32>
      %c0_34 = arith.constant 0 : index
      %c0_35 = arith.constant 0 : index
      %47 = vector.load %arg15[%c0_34, %c0_35] : memref<64x32xf32, #tpu.memory_space<vmem>>, vector<64x32xf32>
      tpu.vector_store %arg15[%c0_34, %c0_35], %46 {strides = array<i32>} : memref<64x32xf32, #tpu.memory_space<vmem>>, vector<64x32xf32>,
    } else {
    }
    %c0 = arith.constant 0 : index
    %c0_1 = arith.constant 0 : index
    %3 = vector.load %arg2[%c0, %c0_1] : memref<128x1xi32, #tpu.memory_space<vmem>>, vector<128x1xi32>
    %c0_2 = arith.constant 0 : index
    %c0_3 = arith.constant 0 : index
    %4 = vector.load %arg3[%c0_2, %c0_3] : memref<128x1xi32, #tpu.memory_space<vmem>>, vector<128x1xi32>
    %5 = tpu.iota {dimensions = array<i32: 1>} : vector<128x128xi32>
    %6 = vector.broadcast %3 : vector<128x1xi32> to vector<128x128xi32>
    %7 = arith.cmpi eq, %5, %6 : vector<128x128xi32>
    %c64_i32 = arith.constant 64 : i32
    %8 = vector.broadcast %c64_i32 : i32 to vector<128x1xi32>
    %9 = arith.addi %4, %8 : vector<128x1xi32>
    %10 = vector.broadcast %9 : vector<128x1xi32> to vector<128x128xi32>
    %11 = arith.cmpi eq, %5, %10 : vector<128x128xi32>
    %12 = arith.ori %7, %11 : vector<128x128xi1>
    %13 = arith.extui %12 : vector<128x128xi1> to vector<128x128xi32>
    %14 = arith.sitofp %13 : vector<128x128xi32> to vector<128x128xf32>
    %c0_4 = arith.constant 0 : index
    %c0_5 = arith.constant 0 : index
    %15 = vector.load %arg14[%c0_4, %c0_5] : memref<128x32xf32, #tpu.memory_space<vmem>>, vector<128x32xf32>
    %cst = arith.constant dense<0.000000e+00> : vector<128x32xf32>
    %16 = tpu.matmul %14, %15, %cst {dimension_numbers = #tpu.dot_dimension_numbers<[1], [0], [0], [1], [0, 0, 1, 1], [], []>} : vector<128x128xf32>, vector<128x32xf32>, vector<128x32xf32> -> vector<128x32xf32>
    %c0_6 = arith.constant 0 : index
    %c0_7 = arith.constant 0 : index
    %17 = vector.load %arg5[%c0_6, %c0_7] : memref<128x4xf32, #tpu.memory_space<vmem>>, vector<128x4xf32>
    %c0_8 = arith.constant 0 : index
    %c0_9 = arith.constant 0 : index
    %18 = vector.load %arg8[%c0_8, %c0_9] : memref<4x32xf32, #tpu.memory_space<vmem>>, vector<4x32xf32>
    %cst_10 = arith.constant dense<0.000000e+00> : vector<128x32xf32>
    %19 = tpu.matmul %17, %18, %cst_10 {dimension_numbers = #tpu.dot_dimension_numbers<[1], [0], [0], [1], [0, 0, 1, 1], [], []>} : vector<128x4xf32>, vector<4x32xf32>, vector<128x32xf32> -> vector<128x32xf32>
    %20 = arith.addf %16, %19 : vector<128x32xf32>
    %c0_11 = arith.constant 0 : index
    %c0_12 = arith.constant 0 : index
    %21 = vector.load %arg9[%c0_11, %c0_12] : memref<1x32xf32, #tpu.memory_space<vmem>>, vector<1x32xf32>
    %22 = vector.broadcast %21 : vector<1x32xf32> to vector<128x32xf32>
    %23 = arith.addf %20, %22 : vector<128x32xf32>
    %cst_13 = arith.constant 0.000000e+00 : f32
    %24 = vector.broadcast %cst_13 : f32 to vector<128x32xf32>
    %25 = arith.maximumf %23, %24 : vector<128x32xf32>
    %26 = tpu.iota {dimensions = array<i32: 0>} : vector<64x128xi32>
    %c0_14 = arith.constant 0 : index
    %c0_15 = arith.constant 0 : index
    %27 = vector.load %arg4[%c0_14, %c0_15] : memref<1x128xi32, #tpu.memory_space<vmem>>, vector<1x128xi32>
    %28 = vector.broadcast %27 : vector<1x128xi32> to vector<64x128xi32>
    %29 = arith.cmpi eq, %28, %26 : vector<64x128xi32>
    %30 = arith.extui %29 : vector<64x128xi1> to vector<64x128xi32>
    %31 = arith.sitofp %30 : vector<64x128xi32> to vector<64x128xf32>
    %c0_16 = arith.constant 0 : index
    %c0_17 = arith.constant 0 : index
    %32 = vector.load %arg15[%c0_16, %c0_17] : memref<64x32xf32, #tpu.memory_space<vmem>>, vector<64x32xf32>
    %cst_18 = arith.constant dense<0.000000e+00> : vector<64x32xf32>
    %33 = tpu.matmul %31, %25, %cst_18 {dimension_numbers = #tpu.dot_dimension_numbers<[1], [0], [0], [1], [0, 0, 1, 1], [], []>} : vector<64x128xf32>, vector<128x32xf32>, vector<64x32xf32> -> vector<64x32xf32>
    %34 = arith.addf %32, %33 : vector<64x32xf32>
    %c0_19 = arith.constant 0 : index
    %c0_20 = arith.constant 0 : index
    %35 = vector.load %arg15[%c0_19, %c0_20] : memref<64x32xf32, #tpu.memory_space<vmem>>, vector<64x32xf32>
    tpu.vector_store %arg15[%c0_19, %c0_20], %34 {strides = array<i32>} : memref<64x32xf32, #tpu.memory_space<vmem>>, vector<64x32xf32>,
    %c2_i32 = arith.constant 2 : i32
    %36 = arith.cmpi eq, %arg0, %c2_i32 : i32
    %37 = arith.extui %36 : i1 to i32
    %c0_i32_21 = arith.constant 0 : i32
    %38 = arith.cmpi ne, %37, %c0_i32_21 : i32
    scf.if %38 {
      %c0_22 = arith.constant 0 : index
      %c0_23 = arith.constant 0 : index
      %39 = vector.load %arg1[%c0_22, %c0_23] : memref<64x8xf32, #tpu.memory_space<vmem>>, vector<64x8xf32>
      %c0_24 = arith.constant 0 : index
      %c0_25 = arith.constant 0 : index
      %40 = vector.load %arg10[%c0_24, %c0_25] : memref<8x8xf32, #tpu.memory_space<vmem>>, vector<8x8xf32>
      %cst_26 = arith.constant dense<0.000000e+00> : vector<64x8xf32>
      %41 = tpu.matmul %39, %40, %cst_26 {dimension_numbers = #tpu.dot_dimension_numbers<[1], [0], [0], [1], [0, 0, 1, 1], [], []>} : vector<64x8xf32>, vector<8x8xf32>, vector<64x8xf32> -> vector<64x8xf32>
      %c0_27 = arith.constant 0 : index
      %c0_28 = arith.constant 0 : index
      %42 = vector.load %arg15[%c0_27, %c0_28] : memref<64x32xf32, #tpu.memory_space<vmem>>, vector<64x32xf32>
      %c0_29 = arith.constant 0 : index
      %c0_30 = arith.constant 0 : index
      %43 = vector.load %arg11[%c0_29, %c0_30] : memref<32x8xf32, #tpu.memory_space<vmem>>, vector<32x8xf32>
      %cst_31 = arith.constant dense<0.000000e+00> : vector<64x8xf32>
      %44 = tpu.matmul %42, %43, %cst_31 {dimension_numbers = #tpu.dot_dimension_numbers<[1], [0], [0], [1], [0, 0, 1, 1], [], []>} : vector<64x32xf32>, vector<32x8xf32>, vector<64x8xf32> -> vector<64x8xf32>
      %45 = arith.addf %41, %44 : vector<64x8xf32>
      %c0_32 = arith.constant 0 : index
      %c0_33 = arith.constant 0 : index
      %46 = vector.load %arg12[%c0_32, %c0_33] : memref<1x8xf32, #tpu.memory_space<vmem>>, vector<1x8xf32>
      %47 = vector.broadcast %46 : vector<1x8xf32> to vector<64x8xf32>
      %48 = arith.addf %45, %47 : vector<64x8xf32>
      %cst_34 = arith.constant 0.000000e+00 : f32
      %49 = vector.broadcast %cst_34 : f32 to vector<64x8xf32>
      %50 = arith.maximumf %48, %49 : vector<64x8xf32>
      %c0_35 = arith.constant 0 : index
      %c0_36 = arith.constant 0 : index
      %51 = vector.load %arg13[%c0_35, %c0_36] : memref<64x8xf32, #tpu.memory_space<vmem>>, vector<64x8xf32>
      tpu.vector_store %arg13[%c0_35, %c0_36], %50 {strides = array<i32>} : memref<64x8xf32, #tpu.memory_space<vmem>>, vector<64x8xf32>,
    } else {
    }
    return
  }
  func.func @transform_0(%arg0: i32) -> (i32, i32) {
    %c0_i32 = arith.constant 0 : i32
    %c0_i32_0 = arith.constant 0 : i32
    %c0_i32_1 = arith.constant 0 : i32
    return %c0_i32, %c0_i32_0 : i32, i32
  }
  func.func @transform_1(%arg0: i32) -> (i32, i32) {
    %c0_i32 = arith.constant 0 : i32
    %c0_i32_0 = arith.constant 0 : i32
    return %arg0, %c0_i32 : i32, i32
  }
  func.func @transform_2(%arg0: i32) -> (i32, i32) {
    %c0_i32 = arith.constant 0 : i32
    %c0_i32_0 = arith.constant 0 : i32
    return %arg0, %c0_i32 : i32, i32
  }
  func.func @transform_3(%arg0: i32) -> (i32, i32) {
    %c0_i32 = arith.constant 0 : i32
    %c0_i32_0 = arith.constant 0 : i32
    return %c0_i32, %arg0 : i32, i32
  }
  func.func @transform_4(%arg0: i32) -> (i32, i32) {
    %c0_i32 = arith.constant 0 : i32
    %c0_i32_0 = arith.constant 0 : i32
    return %arg0, %c0_i32 : i32, i32
  }
  func.func @transform_5(%arg0: i32) -> (i32, i32) {
    %c0_i32 = arith.constant 0 : i32
    %c0_i32_0 = arith.constant 0 : i32
    %c0_i32_1 = arith.constant 0 : i32
    return %c0_i32, %c0_i32_0 : i32, i32
  }
  func.func @transform_6(%arg0: i32) -> (i32, i32) {
    %c0_i32 = arith.constant 0 : i32
    %c0_i32_0 = arith.constant 0 : i32
    %c0_i32_1 = arith.constant 0 : i32
    return %c0_i32, %c0_i32_0 : i32, i32
  }
  func.func @transform_7(%arg0: i32) -> (i32, i32) {
    %c0_i32 = arith.constant 0 : i32
    %c0_i32_0 = arith.constant 0 : i32
    %c0_i32_1 = arith.constant 0 : i32
    return %c0_i32, %c0_i32_0 : i32, i32
  }
  func.func @transform_8(%arg0: i32) -> (i32, i32) {
    %c0_i32 = arith.constant 0 : i32
    %c0_i32_0 = arith.constant 0 : i32
    %c0_i32_1 = arith.constant 0 : i32
    return %c0_i32, %c0_i32_0 : i32, i32
  }
  func.func @transform_9(%arg0: i32) -> (i32, i32) {
    %c0_i32 = arith.constant 0 : i32
    %c0_i32_0 = arith.constant 0 : i32
    %c0_i32_1 = arith.constant 0 : i32
    return %c0_i32, %c0_i32_0 : i32, i32
  }
  func.func @transform_10(%arg0: i32) -> (i32, i32) {
    %c0_i32 = arith.constant 0 : i32
    %c0_i32_0 = arith.constant 0 : i32
    %c0_i32_1 = arith.constant 0 : i32
    return %c0_i32, %c0_i32_0 : i32, i32
  }
  func.func @transform_11(%arg0: i32) -> (i32, i32) {
    %c0_i32 = arith.constant 0 : i32
    %c0_i32_0 = arith.constant 0 : i32
    %c0_i32_1 = arith.constant 0 : i32
    return %c0_i32, %c0_i32_0 : i32, i32
  }
  func.func @transform_12(%arg0: i32) -> (i32, i32) {
    %c0_i32 = arith.constant 0 : i32
    %c0_i32_0 = arith.constant 0 : i32
    %c0_i32_1 = arith.constant 0 : i32
    return %c0_i32, %c0_i32_0 : i32, i32
  }
}

</mosaic_0001>

<bundles_post_ra>
// kernel: tpu_custom_call.1
= control target key start
LH: loop header
LB: loop body
LE: loop exit
PB: predicated region body
PF: predicated region fallthrough
CT: control target
= control target key end

     0   :  { %s2517_s21 = smov 0   ;;  %s2955_s0 = inlined_call_operand.vmem [shape: f32[64,8], index: 0, kind: input, shape index: {}]   ;;  %s2956_s1 = inlined_call_operand.vmem [shape: s32[384,1], index: 1, kind: input, shape index: {}]   ;;  %s2957_s2 = inlined_call_operand.vmem [shape: s32[384,1], index: 2, kind: input, shape index: {}]   ;;  %s2958_s3 = inlined_call_operand.vmem [shape: s32[1,384], index: 3, kind: input, shape index: {}]   ;;  %s2959_s4 = inlined_call_operand.vmem [shape: f32[384,4], index: 4, kind: input, shape index: {}]   ;;  %s2960_s5 = inlined_call_operand.vmem [shape: f32[8,32], index: 5, kind: input, shape index: {}]   ;;  %s2961_s6 = inlined_call_operand.vmem [shape: f32[8,32], index: 6, kind: input, shape index: {}]   ;;  %s2962_s7 = inlined_call_operand.vmem [shape: f32[4,32], index: 7, kind: input, shape index: {}]   ;;  %s2963_s8 = inlined_call_operand.vmem [shape: f32[1,32], index: 8, kind: input, shape index: {}]   ;;  %s2964_s9 = inlined_call_operand.vmem [shape: f32[8,8], index: 9, kind: input, shape index: {}]   ;;  %s2965_s10 = inlined_call_operand.vmem [shape: f32[32,8], index: 10, kind: input, shape index: {}]   ;;  %s2966_s11 = inlined_call_operand.vmem [shape: f32[1,8], index: 11, kind: input, shape index: {}]   ;;  %s2967_s12 = inlined_call_operand.vmem [shape: f32[64,8], index: 12, kind: output, shape index: {}]  }
   0x1 LB: > { %s2523_s22 = sadd.s32 4294967295, %s2447_s21   ;;  %p1921_p0 = scmp.ge.s32.totalorder %s2447_s21, 1  ;;  %s2447_s21 = sphi %s2517_s21, %s22_s21  }
   0x2   : > { %p388_p1 = scmp.lt.s32.totalorder %s2447_s21, 4 }
   0x4   : > { %p389_p2 = pnand %p1921_p0, %p388_p1 }
   0x5   : > { %s1922_s23 = sshll.u32 (!%p389_p2), %s2523_s22, 4  ;;  %p450_p3 = scmp.lt.s32.totalorder (!%p389_p2), %s2523_s22, 2 }
   0x6   : > { %392 = sbr.rel (%p389_p2) target bundleno = 1119 (0x45f), region = 68  ;;  %p439_p4 = scmp.lt.s32.totalorder (!%p389_p2), %s1922_s23, 47 }
   0x7   : > { %p1928_p5 = scmp.ne.s32.totalorder (!%p389_p2), %s2523_s22, 0 }
   0xd   : > { %s2530_s24 = scalar_select %p450_p3, %s2523_s22, 2 }
   0xe   : > { %s2969_s23 = smov (!%p439_p4, %s1922_s23), 47  ;;  %462 = sbr.rel (%p1928_p5) target bundleno = 246 (0xf6), region = 72 }
   0xf   : > { %s452_s27 = scalar_lea.vmem %s2958_s3, %s2530_s24  ;;  %s1923_s28 = sshll.u32 %s2969_s23, 3  ;;  %v471_v0 = vld [vmem:[%s2960_s5] sm:$0xff] (!%p1928_p5)  ;;  %vm472_vm0 = vcmask (!%p1928_p5), 64512   ;;  %v464_v3 = vld [vmem:[%s2955_s0 + $0x8] sm:$0xff] (!%p1928_p5)  ;;  %v465_v4 = vld [vmem:[%s2955_s0 + $0x10] sm:$0xff] (!%p1928_p5)  ;;  %vm602_vm1 = vcmask (!%p1928_p5), 261120  }
  0x10   : > { %s2539_s13 = scalar_lea.vmem %s2956_s1, %s1923_s28  ;;  %s2544_s16 = scalar_lea.vmem %s2957_s2, %s1923_s28  ;;  %v611_v1 = vld [vmem:[%s2961_s6] sm:$0xff] (!%p1928_p5)  ;;  %2144 = vmatprep.subr.mxu0 (!%p1928_p5), %v471_v0  ;;  %v466_v5 = vld [vmem:[%s2955_s0 + $0x18] sm:$0xff] (!%p1928_p5)  ;;  %v468_v7 = vld [vmem:[%s2955_s0 + $0x28] sm:$0xff] (!%p1928_p5)  ;;  %v2449_v10 = vmov (!%p1928_p5), 0.0  }
  0x11   : > { %s2549_s19 = scalar_lea.vmem %s2959_s4, %s1923_s28  ;;  %v463_v2 = vld [vmem:[%s2955_s0] sm:$0xff] (!%p1928_p5)  ;;  %2158 = vmatprep.subr.mxu1 (!%p1928_p5), %v611_v1  ;;  %2145 = vmatpush3.msra.mxu0 (!%p1928_p5), %v471_v0  ;;  %v469_v8 = vld [vmem:[%s2955_s0 + $0x30] sm:$0xff] (!%p1928_p5)  ;;  %v470_v9 = vld [vmem:[%s2955_s0 + $0x38] sm:$0xff] (!%p1928_p5)  ;;  %725 = vst.msk [vmem:[#allocation3] sm:$0xff] (!%p1928_p5), %vm602_vm1, %v2449_v10 }
  0x12   : > { %2146 = vmatprep.mubr.msk.f32.mxu0 (!%p1928_p5), %vm472_vm0, %v463_v2  ;;  %2159 = vmatpush3.msra.mxu1 (!%p1928_p5), %v611_v1  ;;  %v467_v6 = vld [vmem:[%s2955_s0 + $0x20] sm:$0xff] (!%p1928_p5)  ;;  %726 = vst.msk [vmem:[#allocation3 + $0x8] sm:$0xff] (!%p1928_p5), %vm602_vm1, %v2449_v10  ;;  %727 = vst.msk [vmem:[#allocation3 + $0x10] sm:$0xff] (!%p1928_p5), %vm602_vm1, %v2449_v10 }
  0x13   : > { %2160 = vmatprep.mubr.msk.f32.mxu1 (!%p1928_p5), %vm472_vm0, %v463_v2  ;;  %2147 = vmatmul.mubr.msk.f32.vlgmr.msra.gmra.mrb[0].mxu0 (!%p1928_p5), %vm472_vm0, %v464_v3  ;;  %728 = vst.msk [vmem:[#allocation3 + $0x18] sm:$0xff] (!%p1928_p5), %vm602_vm1, %v2449_v10  ;;  %729 = vst.msk [vmem:[#allocation3 + $0x20] sm:$0xff] (!%p1928_p5), %vm602_vm1, %v2449_v10 }
  0x14   : > { %2161 = vmatmul.mubr.msk.f32.vlgmr.msra.gmra.mrb[0].mxu1 (!%p1928_p5), %vm472_vm0, %v464_v3  ;;  %2149 = vmatprep.mubr.msk.f32.mxu0 (!%p1928_p5), %vm472_vm0, %v465_v4  ;;  %730 = vst.msk [vmem:[#allocation3 + $0x28] sm:$0xff] (!%p1928_p5), %vm602_vm1, %v2449_v10  ;;  %731 = vst.msk [vmem:[#allocation3 + $0x30] sm:$0xff] (!%p1928_p5), %vm602_vm1, %v2449_v10 }
  0x15   : > { %2163 = vmatprep.mubr.msk.f32.mxu1 %vm472_vm0, %v465_v4  ;;  %732 = vst.msk [vmem:[#allocation3 + $0x38] sm:$0xff] %vm602_vm1, %v2449_v10 }
  0x17   : > { %2150 = vmatmul.mubr.msk.f32.gmra.mrb[2].mxu0 %vm472_vm0, %v466_v5 }
  0x18   : > { %2164 = vmatmul.mubr.msk.f32.gmra.mrb[2].mxu1 %vm472_vm0, %v466_v5  ;;  %2152 = vmatprep.mubr.msk.f32.mxu0 %vm472_vm0, %v467_v6 }
  0x19   : > { %2166 = vmatprep.mubr.msk.f32.mxu1 %vm472_vm0, %v467_v6 }
  0x1b   : > { %2153 = vmatmul.mubr.msk.f32.gmra.mrb[4].mxu0 %vm472_vm0, %v468_v7 }
  0x1c   : > { %2167 = vmatmul.mubr.msk.f32.gmra.mrb[4].mxu1 %vm472_vm0, %v468_v7  ;;  %2155 = vmatprep.mubr.msk.f32.mxu0 %vm472_vm0, %v469_v8 }
  0x1d   : > { %2169 = vmatprep.mubr.msk.f32.mxu1 %vm472_vm0, %v469_v8 }
  0x1f   : > { %2156 = vmatmul.mubr.msk.f32.gmra.mrb[6].mxu0 %vm472_vm0, %v470_v9 }
  0x20   : > { %2170 = vmatmul.mubr.msk.f32.gmra.mrb[6].mxu1 %vm472_vm0, %v470_v9 }
  0xe6   : > { %v2148_v11 = vpop.f32.mrb[0].mxu0 }
  0xe7   : > { %v2162_v12 = vpop.f32.mrb[0].mxu1  ;;  %604 = vst.msk [vmem:[#allocation2 + $0x8] sm:$0xff] %vm602_vm1, %v2148_v11  ;;  %v563_v13 = vpop.f32.mrb[1].mxu0 }
  0xe8   : > { %718 = vst.msk [vmem:[#allocation2 + $0x48] sm:$0xff] %vm602_vm1, %v2162_v12  ;;  %v678_v14 = vpop.f32.mrb[1].mxu1  ;;  %603 = vst.msk [vmem:[#allocation2] sm:$0xff] %vm602_vm1, %v563_v13 }
  0xe9   : > { %717 = vst.msk [vmem:[#allocation2 + $0x40] sm:$0xff] %vm602_vm1, %v678_v14 }
  0xea   : > { %v2151_v15 = vpop.f32.mrb[2].mxu0 }
  0xeb   : > { %v2165_v16 = vpop.f32.mrb[2].mxu1  ;;  %606 = vst.msk [vmem:[#allocation2 + $0x18] sm:$0xff] %vm602_vm1, %v2151_v15  ;;  %v573_v17 = vpop.f32.mrb[3].mxu0 }
  0xec   : > { %720 = vst.msk [vmem:[#allocation2 + $0x58] sm:$0xff] %vm602_vm1, %v2165_v16  ;;  %v688_v18 = vpop.f32.mrb[3].mxu1  ;;  %605 = vst.msk [vmem:[#allocation2 + $0x10] sm:$0xff] %vm602_vm1, %v573_v17 }
  0xed   : > { %719 = vst.msk [vmem:[#allocation2 + $0x50] sm:$0xff] %vm602_vm1, %v688_v18 }
  0xee   : > { %v2154_v19 = vpop.f32.mrb[4].mxu0 }
  0xef   : > { %v2168_v20 = vpop.f32.mrb[4].mxu1  ;;  %608 = vst.msk [vmem:[#allocation2 + $0x28] sm:$0xff] %vm602_vm1, %v2154_v19  ;;  %v583_v21 = vpop.f32.mrb[5].mxu0 }
  0xf0   : > { %722 = vst.msk [vmem:[#allocation2 + $0x68] sm:$0xff] %vm602_vm1, %v2168_v20  ;;  %v698_v22 = vpop.f32.mrb[5].mxu1  ;;  %607 = vst.msk [vmem:[#allocation2 + $0x20] sm:$0xff] %vm602_vm1, %v583_v21 }
  0xf1   : > { %721 = vst.msk [vmem:[#allocation2 + $0x60] sm:$0xff] %vm602_vm1, %v698_v22 }
  0xf2   : > { %v2157_v23 = vpop.f32.mrb[6].mxu0 }
  0xf3   : > { %v2171_v24 = vpop.f32.mrb[6].mxu1  ;;  %610 = vst.msk [vmem:[#allocation2 + $0x38] sm:$0xff] %vm602_vm1, %v2157_v23  ;;  %v593_v25 = vpop.f32.mrb[7].mxu0 }
  0xf4   : > { %724 = vst.msk [vmem:[#allocation2 + $0x78] sm:$0xff] %vm602_vm1, %v2171_v24  ;;  %v708_v26 = vpop.f32.mrb[7].mxu1  ;;  %609 = vst.msk [vmem:[#allocation2 + $0x30] sm:$0xff] %vm602_vm1, %v593_v25 }
  0xf5   : > { %723 = vst.msk [vmem:[#allocation2 + $0x70] sm:$0xff] %vm602_vm1, %v708_v26 }
  0xf6 PF: > { %v734_v27 = vld [vmem:[%s2539_s13 + $0x8] sm:$0xff]  ;;  %v733_v28 = vld [vmem:[%s2539_s13] sm:$0xff]  ;;  %v2450_v30 = vmov 0   ;;  %v751_v34 = vld [vmem:[%s2544_s16 + $0x10] sm:$0xff]  ;;  %vm1041_vm2 = vcmask 1043456   ;;  %vm992_vm3 = vcmask 31744  }
  0xf7   : > { %v750_v29 = vld [vmem:[%s2544_s16 + $0x8] sm:$0xff]  ;;  %2440 = vset.pattern.permute.xlu1 %v2450_v30  ;;  %2439 = vset.pattern.permute.xlu0 %v2450_v30  ;;  %v749_v31 = vld [vmem:[%s2544_s16] sm:$0xff]  ;;  %v833_v35 = vadd.s32 64, %v751_v34  ;;  %v735_v36 = vld [vmem:[%s2539_s13 + $0x10] sm:$0xff]  ;;  %p2012_p6 = scmp.ne.s32.totalorder %s2523_s22, 2 }
  0xf8   : > { %771 = vperm.xlu1 %2440, %v734_v27   ;;  %768 = vperm.xlu0 %2439, %v733_v28   ;;  %v832_v32 = vadd.s32 64, %v750_v29  ;;  %v831_v33 = vadd.s32 64, %v749_v31  ;;  %v752_v37 = vld [vmem:[%s2544_s16 + $0x18] sm:$0xff]  ;;  %v753_v40 = vld [vmem:[%s2544_s16 + $0x20] sm:$0xff]  ;;  %v960_v42 = vld [vmem:[#allocation2 + $0x8] sm:$0xff] }
  0xf9   : > { %v834_v38 = vadd.s32 64, %v752_v37  ;;  %v736_v39 = vld [vmem:[%s2539_s13 + $0x18] sm:$0xff]  ;;  %v959_v41 = vld [vmem:[#allocation2] sm:$0xff]  ;;  %v961_v43 = vld [vmem:[#allocation2 + $0x10] sm:$0xff]  ;;  %v835_v47 = vadd.s32 64, %v753_v40 }
  0xfa   : > { %v962_v44 = vld [vmem:[#allocation2 + $0x18] sm:$0xff]  ;;  %v2332_v45 = vpack.c.bf16 %v960_v42, %v959_v41  ;;  %v963_v48 = vld [vmem:[#allocation2 + $0x20] sm:$0xff]  ;;  %v964_v49 = vld [vmem:[#allocation2 + $0x28] sm:$0xff] }
  0xfb   : > { %v2336_v46 = vpack.c.bf16 %v962_v44, %v961_v43  ;;  %v737_v50 = vld [vmem:[%s2539_s13 + $0x20] sm:$0xff]  ;;  %v754_v51 = vld [vmem:[%s2544_s16 + $0x28] sm:$0xff]  ;;  %v2340_v54 = vpack.c.bf16 %v964_v49, %v963_v48  ;;  %v965_v57 = vld [vmem:[#allocation2 + $0x30] sm:$0xff] }
  0xfc   : > { %851 = vperm.xlu1 %2440, %v832_v32   ;;  %848 = vperm.xlu0 %2439, %v831_v33   ;;  %v991_v52 = vld [vmem:[%s2962_s7] sm:$0xf]  ;;  %v976_v55 = vld [vmem:[%s2549_s19 + $0x8] sm:$0xff]  ;;  %v836_v56 = vadd.s32 64, %v754_v51  ;;  %v966_v58 = vld [vmem:[#allocation2 + $0x38] sm:$0xff] }
  0xfd   : > { %2333 = vmatprep.subr.bf16.mxu0 %v2332_v45  ;;  %v975_v53 = vld [vmem:[%s2549_s19] sm:$0xff]  ;;  %2172 = vmatprep.subr.msk.mxu1 %vm1041_vm2, %v991_v52  ;;  %v977_v59 = vld [vmem:[%s2549_s19 + $0x10] sm:$0xff]  ;;  %v738_v60 = vld [vmem:[%s2539_s13 + $0x28] sm:$0xff]  ;;  %v2344_v62 = vpack.c.bf16 %v966_v58, %v965_v57 }
  0xfe   : > { %2335 = vmatpush3.bf16.msra.mxu0 %v2332_v45  ;;  %v755_v61 = vld [vmem:[%s2544_s16 + $0x30] sm:$0xff]  ;;  %2173 = vmatpush3.msk.msra.mxu1 %vm1041_vm2, %v991_v52  ;;  %v978_v63 = vld [vmem:[%s2549_s19 + $0x18] sm:$0xff]  ;;  %v967_v1 = vld [vmem:[#allocation2 + $0x40] sm:$0xff] }
  0xff   : > { %2337 = vmatprep.subr.bf16.mxu0 %v2336_v46  ;;  %2174 = vmatprep.mubr.msk.f32.mxu1 %vm992_vm3, %v975_v53  ;;  %v837_v0 = vadd.s32 64, %v755_v61  ;;  %v968_v2 = vld [vmem:[#allocation2 + $0x48] sm:$0xff]  ;;  %v739_v3 = vld [vmem:[%s2539_s13 + $0x30] sm:$0xff]  ;;  %v756_v4 = vld [vmem:[%s2544_s16 + $0x38] sm:$0xff]  ;;  %v765_v53 = vlaneseq }
 0x100   : > { %854 = vperm.xlu1 %2440, %v833_v35   ;;  %774 = vperm.xlu0 %2439, %v735_v36   ;;  %v979_v5 = vld [vmem:[%s2549_s19 + $0x20] sm:$0xff]  ;;  %v2348_v6 = vpack.c.bf16 %v968_v2, %v967_v1  ;;  %v980_v7 = vld [vmem:[%s2549_s19 + $0x28] sm:$0xff]  ;;  %v838_v8 = vadd.s32 64, %v756_v4  ;;  %v969_v9 = vld [vmem:[#allocation2 + $0x50] sm:$0xff] }
 0x101   : > { %2175 = vmatmul.mubr.msk.f32.vlgmr.msra.gmra.mrb[0].mxu1 %vm992_vm3, %v976_v55  ;;  %v970_v10 = vld [vmem:[#allocation2 + $0x58] sm:$0xff]  ;;  %v757_v12 = vld [vmem:[%s2544_s16 + $0x40] sm:$0xff]  ;;  %v972_v17 = vld [vmem:[#allocation2 + $0x68] sm:$0xff] }
 0x102   : > { %2339 = vmatpush3.bf16.msra.mxu0 %v2336_v46  ;;  %2177 = vmatprep.mubr.msk.f32.mxu1 %vm992_vm3, %v977_v59  ;;  %v740_v11 = vld [vmem:[%s2539_s13 + $0x38] sm:$0xff]  ;;  %v2352_v13 = vpack.c.bf16 %v970_v10, %v969_v9  ;;  %v839_v14 = vadd.s32 64, %v757_v12  ;;  %v741_v15 = vld [vmem:[%s2539_s13 + $0x40] sm:$0xff]  ;;  %v758_v18 = vld [vmem:[%s2544_s16 + $0x48] sm:$0xff]  ;;  %v2451_v59 = vmov 1.0  }
 0x103   : > { %2341 = vmatprep.subr.bf16.mxu0 %v2340_v54  ;;  %v971_v16 = vld [vmem:[#allocation2 + $0x60] sm:$0xff]  ;;  %v981_v19 = vld [vmem:[%s2549_s19 + $0x30] sm:$0xff]  ;;  %v982_v20 = vld [vmem:[%s2549_s19 + $0x38] sm:$0xff]  ;;  %v840_v22 = vadd.s32 64, %v758_v18 }
 0x104   : > { %857 = vperm.xlu1 %2440, %v834_v38   ;;  %777 = vperm.xlu0 %2439, %v736_v39   ;;  %v2356_v21 = vpack.c.bf16 %v972_v17, %v971_v16  ;;  %v973_v23 = vld [vmem:[#allocation2 + $0x70] sm:$0xff]  ;;  %v974_v24 = vld [vmem:[#allocation2 + $0x78] sm:$0xff]  ;;  %v742_v25 = vld [vmem:[%s2539_s13 + $0x48] sm:$0xff] }
 0x105   : > { %2178 = vmatmul.mubr.msk.f32.gmra.mrb[2].mxu1 %vm992_vm3, %v978_v63  ;;  %v759_v26 = vld [vmem:[%s2544_s16 + $0x50] sm:$0xff]  ;;  %v2360_v27 = vpack.c.bf16 %v974_v24, %v973_v23  ;;  %v760_v30 = vld [vmem:[%s2544_s16 + $0x58] sm:$0xff]  ;;  %v983_v31 = vld [vmem:[%s2549_s19 + $0x40] sm:$0xff] }
 0x106   : > { %2343 = vmatpush3.bf16.msra.mxu0 %v2340_v54  ;;  %2180 = vmatprep.mubr.msk.f32.mxu1 %vm992_vm3, %v979_v5  ;;  %v841_v28 = vadd.s32 64, %v759_v26  ;;  %v743_v29 = vld [vmem:[%s2539_s13 + $0x50] sm:$0xff]  ;;  %v984_v32 = vld [vmem:[%s2549_s19 + $0x48] sm:$0xff]  ;;  %v842_v33 = vadd.s32 64, %v760_v30  ;;  %v744_v34 = vld [vmem:[%s2539_s13 + $0x58] sm:$0xff] }
 0x107   : > { %2345 = vmatprep.subr.bf16.mxu0 %v2344_v62  ;;  %v761_v35 = vld [vmem:[%s2544_s16 + $0x60] sm:$0xff]  ;;  %v762_v38 = vld [vmem:[%s2544_s16 + $0x68] sm:$0xff]  ;;  %v985_v39 = vld [vmem:[%s2549_s19 + $0x50] sm:$0xff] }
 0x108   : > { %860 = vperm.xlu1 %2440, %v835_v47   ;;  %780 = vperm.xlu0 %2439, %v737_v50   ;;  %v843_v36 = vadd.s32 64, %v761_v35  ;;  %v745_v37 = vld [vmem:[%s2539_s13 + $0x60] sm:$0xff]  ;;  %v986_v40 = vld [vmem:[%s2549_s19 + $0x58] sm:$0xff]  ;;  %v844_v41 = vadd.s32 64, %v762_v38  ;;  %v746_v42 = vld [vmem:[%s2539_s13 + $0x68] sm:$0xff] }
 0x109   : > { %2181 = vmatmul.mubr.msk.f32.gmra.mrb[4].mxu1 %vm992_vm3, %v980_v7  ;;  %v763_v43 = vld [vmem:[%s2544_s16 + $0x70] sm:$0xff]  ;;  %v764_v46 = vld [vmem:[%s2544_s16 + $0x78] sm:$0xff]  ;;  %v987_v47 = vld [vmem:[%s2549_s19 + $0x60] sm:$0xff] }
 0x10a   : > { %2347 = vmatpush3.bf16.msra.mxu0 %v2344_v62  ;;  %2183 = vmatprep.mubr.msk.f32.mxu1 %vm992_vm3, %v981_v19  ;;  %v845_v44 = vadd.s32 64, %v763_v43  ;;  %v747_v45 = vld [vmem:[%s2539_s13 + $0x70] sm:$0xff]  ;;  %v988_v48 = vld [vmem:[%s2549_s19 + $0x68] sm:$0xff]  ;;  %v846_v49 = vadd.s32 64, %v764_v46  ;;  %v748_v50 = vld [vmem:[%s2539_s13 + $0x78] sm:$0xff] }
 0x10b   : > { %2349 = vmatprep.subr.bf16.mxu0 %v2348_v6  ;;  %v989_v51 = vld [vmem:[%s2549_s19 + $0x70] sm:$0xff]  ;;  %v990_v52 = vld [vmem:[%s2549_s19 + $0x78] sm:$0xff] }
 0x10c   : > { %863 = vperm.xlu1 %2440, %v836_v56   ;;  %783 = vperm.xlu0 %2439, %v738_v60   ;;  %v2692_v56 = vand.u32 127, %v765_v53 }
 0x10d   : > { %2184 = vmatmul.mubr.msk.f32.gmra.mrb[6].mxu1 %vm992_vm3, %v982_v20 }
 0x10e   : > { %2351 = vmatpush3.bf16.msra.mxu0 %v2348_v6  ;;  %2186 = vmatprep.mubr.msk.f32.mxu1 %vm992_vm3, %v983_v31 }
 0x10f   : > { %2353 = vmatprep.subr.bf16.mxu0 %v2352_v13 }
 0x110   : > { %866 = vperm.xlu1 %2440, %v837_v0   ;;  %786 = vperm.xlu0 %2439, %v739_v3  }
 0x111   : > { %2187 = vmatmul.mubr.msk.f32.gmra.mrb[8].mxu1 %vm992_vm3, %v984_v32 }
 0x112   : > { %2355 = vmatpush3.bf16.msra.mxu0 %v2352_v13  ;;  %2189 = vmatprep.mubr.msk.f32.mxu1 %vm992_vm3, %v985_v39 }
 0x113   : > { %2357 = vmatprep.subr.bf16.mxu0 %v2356_v21 }
 0x114   : > { %869 = vperm.xlu1 %2440, %v838_v8   ;;  %789 = vperm.xlu0 %2439, %v740_v11  }
 0x115   : > { %2190 = vmatmul.mubr.msk.f32.gmra.mrb[10].mxu1 %vm992_vm3, %v986_v40  ;;  %v1375_v40 = vshrl.u32 %v765_v53, 7 }
 0x116   : > { %2359 = vmatpush3.bf16.msra.mxu0 %v2356_v21  ;;  %2192 = vmatprep.mubr.msk.f32.mxu1 %vm992_vm3, %v987_v47 }
 0x117   : > { %2361 = vmatprep.subr.bf16.mxu0 %v2360_v27  ;;  %v2772_v43 = vadd.s32 16, %v1375_v40  ;;  %v2782_v46 = vadd.s32 40, %v1375_v40  ;;  %v2788_v47 = vadd.s32 48, %v1375_v40 }
 0x118   : > { %872 = vperm.xlu1 %2440, %v839_v14   ;;  %792 = vperm.xlu0 %2439, %v741_v15  }
 0x119   : > { %2193 = vmatmul.mubr.msk.f32.gmra.mrb[12].mxu1 %vm992_vm3, %v988_v48  ;;  %v2790_v48 = vadd.s32 56, %v1375_v40 }
 0x11a   : > { %2363 = vmatpush3.bf16.msra.mxu0 %v2360_v27  ;;  %2195 = vmatprep.mubr.msk.f32.mxu1 %vm992_vm3, %v989_v51 }
 0x11c   : > { %875 = vperm.xlu1 %2440, %v840_v22   ;;  %795 = vperm.xlu0 %2439, %v742_v25  }
 0x11d   : > { %2196 = vmatmul.mubr.msk.f32.gmra.mrb[14].mxu1 %vm992_vm3, %v990_v52 }
 0x120   : > { %878 = vperm.xlu1 %2440, %v841_v28   ;;  %798 = vperm.xlu0 %2439, %v743_v29  }
 0x124   : > { %881 = vperm.xlu1 %2440, %v842_v33   ;;  %801 = vperm.xlu0 %2439, %v744_v34  }
 0x128   : > { %884 = vperm.xlu1 %2440, %v843_v36   ;;  %804 = vperm.xlu0 %2439, %v745_v37  }
 0x12c   : > { %887 = vperm.xlu1 %2440, %v844_v41   ;;  %807 = vperm.xlu0 %2439, %v746_v42   ;;  %v2764_v41 = vld [vmem:[%s452_s27] ss:$0 sm:$0xff]  ;;  %v2767_v42 = vadd.s32 8, %v1375_v40 }
 0x130   : > { %890 = vperm.xlu1 %2440, %v845_v44   ;;  %810 = vperm.xlu0 %2439, %v747_v45   ;;  %v2774_v44 = vadd.s32 24, %v1375_v40  ;;  %v2780_v45 = vadd.s32 32, %v1375_v40 }
 0x134   : > { %893 = vperm.xlu1 %2440, %v846_v49   ;;  %813 = vperm.xlu0 %2439, %v748_v50   ;;  %v2799_v50 = vld [vmem:[%s2963_s8] ss:$0 sm:$0xff] }
 0x177   : > { %v772_v54 = vpop.permute.xlu1 %771  ;;  %v769_v55 = vpop.permute.xlu0 %768 }
 0x178   : > { %vm816_vm4 = vcmp.eq.s32.totalorder %v2692_v56, %v772_v54  ;;  %vm815_vm7 = vcmp.eq.s32.totalorder %v2692_v56, %v769_v55 }
 0x17b   : > { %v852_v57 = vpop.permute.xlu1 %851  ;;  %v849_v58 = vpop.permute.xlu0 %848 }
 0x17c   : > { %vm896_vm5 = vcmp.eq.s32.totalorder %v2692_v56, %v852_v57  ;;  %vm895_vm6 = vcmp.eq.s32.totalorder %v2692_v56, %v849_v58 }
 0x17d   : > { %vm912_vm8 = vmor %vm816_vm4, %vm896_vm5 }
 0x17e   : > { %vm911_vm9 = vmor %vm815_vm7, %vm895_vm6 }
 0x17f   : > { %2230 = vmatprep.mubr.msk.f32.mxu0 %vm911_vm9, %v2451_v59  ;;  %v855_v60 = vpop.permute.xlu1 %854  ;;  %v775_v61 = vpop.permute.xlu0 %774 }
 0x180   : > { %vm897_vm10 = vcmp.eq.s32.totalorder %v2692_v56, %v855_v60  ;;  %2231 = vmatmul.mubr.msk.f32.vlgmr.msra.gmra.mrb[0].mxu0 %vm912_vm8, %v2451_v59  ;;  %vm817_vm11 = vcmp.eq.s32.totalorder %v2692_v56, %v775_v61 }
 0x181   : > { %vm913_vm12 = vmor %vm817_vm11, %vm897_vm10 }
 0x182   : > { %2233 = vmatprep.mubr.msk.f32.mxu0 %vm913_vm12, %v2451_v59 }
 0x183   : > { %v858_v62 = vpop.permute.xlu1 %857  ;;  %v778_v63 = vpop.permute.xlu0 %777 }
 0x184   : > { %vm898_vm13 = vcmp.eq.s32.totalorder %v2692_v56, %v858_v62  ;;  %vm818_vm14 = vcmp.eq.s32.totalorder %v2692_v56, %v778_v63 }
 0x185   : > { %vm914_vm15 = vmor %vm818_vm14, %vm898_vm13 }
 0x186   : > { %2234 = vmatmul.mubr.msk.f32.gmra.mrb[2].mxu0 %vm914_vm15, %v2451_v59 }
 0x187   : > { %v861_v0 = vpop.permute.xlu1 %860  ;;  %v781_v1 = vpop.permute.xlu0 %780 }
 0x188   : > { %vm899_vm0 = vcmp.eq.s32.totalorder %v2692_v56, %v861_v0  ;;  %vm819_vm1 = vcmp.eq.s32.totalorder %v2692_v56, %v781_v1 }
 0x189   : > { %vm915_vm2 = vmor %vm819_vm1, %vm899_vm0 }
 0x18a   : > { %2236 = vmatprep.mubr.msk.f32.mxu0 %vm915_vm2, %v2451_v59 }
 0x18b   : > { %v864_v2 = vpop.permute.xlu1 %863  ;;  %v784_v3 = vpop.permute.xlu0 %783 }
 0x18c   : > { %vm900_vm3 = vcmp.eq.s32.totalorder %v2692_v56, %v864_v2  ;;  %vm820_vm4 = vcmp.eq.s32.totalorder %v2692_v56, %v784_v3 }
 0x18d   : > { %vm916_vm5 = vmor %vm820_vm4, %vm900_vm3 }
 0x18e   : > { %2237 = vmatmul.mubr.msk.f32.gmra.mrb[4].mxu0 %vm916_vm5, %v2451_v59 }
 0x18f   : > { %v867_v4 = vpop.permute.xlu1 %866  ;;  %v787_v5 = vpop.permute.xlu0 %786 }
 0x190   : > { %vm901_vm6 = vcmp.eq.s32.totalorder %v2692_v56, %v867_v4  ;;  %vm821_vm7 = vcmp.eq.s32.totalorder %v2692_v56, %v787_v5 }
 0x191   : > { %vm917_vm8 = vmor %vm821_vm7, %vm901_vm6 }
 0x192   : > { %2239 = vmatprep.mubr.msk.f32.mxu0 %vm917_vm8, %v2451_v59 }
 0x193   : > { %v870_v6 = vpop.permute.xlu1 %869  ;;  %v790_v7 = vpop.permute.xlu0 %789 }
 0x194   : > { %vm902_vm9 = vcmp.eq.s32.totalorder %v2692_v56, %v870_v6  ;;  %vm822_vm10 = vcmp.eq.s32.totalorder %v2692_v56, %v790_v7 }
 0x195   : > { %vm918_vm11 = vmor %vm822_vm10, %vm902_vm9 }
 0x196   : > { %2240 = vmatmul.mubr.msk.f32.gmra.mrb[6].mxu0 %vm918_vm11, %v2451_v59 }
 0x197   : > { %v873_v8 = vpop.permute.xlu1 %872  ;;  %v793_v9 = vpop.permute.xlu0 %792 }
 0x198   : > { %vm903_vm12 = vcmp.eq.s32.totalorder %v2692_v56, %v873_v8  ;;  %vm823_vm13 = vcmp.eq.s32.totalorder %v2692_v56, %v793_v9 }
 0x199   : > { %vm919_vm14 = vmor %vm823_vm13, %vm903_vm12 }
 0x19a   : > { %2242 = vmatprep.mubr.msk.f32.mxu0 %vm919_vm14, %v2451_v59 }
 0x19b   : > { %v876_v10 = vpop.permute.xlu1 %875  ;;  %v796_v11 = vpop.permute.xlu0 %795 }
 0x19c   : > { %vm904_vm15 = vcmp.eq.s32.totalorder %v2692_v56, %v876_v10  ;;  %vm824_vm0 = vcmp.eq.s32.totalorder %v2692_v56, %v796_v11 }
 0x19d   : > { %vm920_vm1 = vmor %vm824_vm0, %vm904_vm15 }
 0x19e   : > { %2243 = vmatmul.mubr.msk.f32.gmra.mrb[8].mxu0 %vm920_vm1, %v2451_v59 }
 0x19f   : > { %v879_v12 = vpop.permute.xlu1 %878  ;;  %v799_v13 = vpop.permute.xlu0 %798 }
 0x1a0   : > { %vm905_vm2 = vcmp.eq.s32.totalorder %v2692_v56, %v879_v12  ;;  %vm825_vm3 = vcmp.eq.s32.totalorder %v2692_v56, %v799_v13 }
 0x1a1   : > { %vm921_vm4 = vmor %vm825_vm3, %vm905_vm2 }
 0x1a2   : > { %2245 = vmatprep.mubr.msk.f32.mxu0 %vm921_vm4, %v2451_v59  ;;  %vm1388_vm4 = vcmp.eq.s32.totalorder %v2764_v41, %v1375_v40 }
 0x1a3   : > { %v882_v14 = vpop.permute.xlu1 %881  ;;  %v802_v15 = vpop.permute.xlu0 %801  ;;  %2286 = vmatprep.mubr.msk.f32.mxu1 %vm1388_vm4, %v2451_v59 }
 0x1a4   : > { %vm906_vm5 = vcmp.eq.s32.totalorder %v2692_v56, %v882_v14  ;;  %vm826_vm6 = vcmp.eq.s32.totalorder %v2692_v56, %v802_v15 }
 0x1a5   : > { %vm922_vm7 = vmor %vm826_vm6, %vm906_vm5  ;;  %vm1389_vm5 = vcmp.eq.s32.totalorder %v2764_v41, %v2767_v42  ;;  %vm1390_vm6 = vcmp.eq.s32.totalorder %v2764_v41, %v2772_v43 }
 0x1a6   : > { %2246 = vmatmul.mubr.msk.f32.gmra.mrb[10].mxu0 %vm922_vm7, %v2451_v59  ;;  %vm1391_vm7 = vcmp.eq.s32.totalorder %v2764_v41, %v2774_v44 }
 0x1a7   : > { %v885_v16 = vpop.permute.xlu1 %884  ;;  %v805_v17 = vpop.permute.xlu0 %804 }
 0x1a8   : > { %vm907_vm8 = vcmp.eq.s32.totalorder %v2692_v56, %v885_v16  ;;  %vm827_vm9 = vcmp.eq.s32.totalorder %v2692_v56, %v805_v17 }
 0x1a9   : > { %vm923_vm10 = vmor %vm827_vm9, %vm907_vm8  ;;  %vm1392_vm8 = vcmp.eq.s32.totalorder %v2764_v41, %v2780_v45  ;;  %vm1393_vm9 = vcmp.eq.s32.totalorder %v2764_v41, %v2782_v46  ;;  %v1414_v46 = vld [vmem:[#allocation3 + $0x10] sm:$0xff] }
 0x1aa   : > { %2248 = vmatprep.mubr.msk.f32.mxu0 %vm923_vm10, %v2451_v59  ;;  %vm1394_vm10 = vcmp.eq.s32.totalorder %v2764_v41, %v2788_v47 }
 0x1ab   : > { %v888_v18 = vpop.permute.xlu1 %887  ;;  %v808_v19 = vpop.permute.xlu0 %807 }
 0x1ac   : > { %vm908_vm11 = vcmp.eq.s32.totalorder %v2692_v56, %v888_v18  ;;  %vm828_vm12 = vcmp.eq.s32.totalorder %v2692_v56, %v808_v19 }
 0x1ad   : > { %vm924_vm13 = vmor %vm828_vm12, %vm908_vm11  ;;  %vm1395_vm11 = vcmp.eq.s32.totalorder %v2764_v41, %v2790_v48  ;;  %vm1533_vm12 = vcmask 261120  }
 0x1ae   : > { %2249 = vmatmul.mubr.msk.f32.gmra.mrb[12].mxu0 %vm924_vm13, %v2451_v59  ;;  %vm1696_vm13 = vcmask (!%p2012_p6), 64512  }
 0x1af   : > { %v891_v20 = vpop.permute.xlu1 %890  ;;  %v811_v21 = vpop.permute.xlu0 %810 }
 0x1b0   : > { %vm909_vm14 = vcmp.eq.s32.totalorder %v2692_v56, %v891_v20  ;;  %vm829_vm15 = vcmp.eq.s32.totalorder %v2692_v56, %v811_v21 }
 0x1b1   : > { %vm925_vm0 = vmor %vm829_vm15, %vm909_vm14 }
 0x1b2   : > { %2251 = vmatprep.mubr.msk.f32.mxu0 %vm925_vm0, %v2451_v59 }
 0x1b3   : > { %v894_v22 = vpop.permute.xlu1 %893  ;;  %v814_v23 = vpop.permute.xlu0 %813 }
 0x1b4   : > { %vm910_vm1 = vcmp.eq.s32.totalorder %v2692_v56, %v894_v22  ;;  %vm830_vm2 = vcmp.eq.s32.totalorder %v2692_v56, %v814_v23 }
 0x1b5   : > { %vm926_vm3 = vmor %vm830_vm2, %vm910_vm1 }
 0x1b6   : > { %2252 = vmatmul.mubr.msk.f32.gmra.mrb[14].mxu0 %vm926_vm3, %v2451_v59 }
 0x1d4   : > { %v2176_v24 = vpop.f32.mrb[0].mxu1 }
 0x1d5   : > { %v1111_v25 = vpop.f32.mrb[1].mxu1 }
 0x1d8   : > { %v2179_v26 = vpop.f32.mrb[2].mxu1 }
 0x1d9   : > { %v1121_v27 = vpop.f32.mrb[3].mxu1 }
 0x1dc   : > { %v2182_v28 = vpop.f32.mrb[4].mxu1 }
 0x1dd   : > { %v1131_v29 = vpop.f32.mrb[5].mxu1 }
 0x1e0   : > { %v2185_v30 = vpop.f32.mrb[6].mxu1 }
 0x1e1   : > { %v1141_v31 = vpop.f32.mrb[7].mxu1 }
 0x1e4   : > { %v2742_v32 = vpop.f32.mrb[8].mxu1 }
 0x1e5   : > { %v2744_v33 = vpop.f32.mrb[9].mxu1 }
 0x1e8   : > { %v2746_v34 = vpop.f32.mrb[10].mxu1 }
 0x1e9   : > { %v2748_v35 = vpop.f32.mrb[11].mxu1 }
 0x1ec   : > { %v2750_v36 = vpop.f32.mrb[12].mxu1 }
 0x1ed   : > { %v2752_v37 = vpop.f32.mrb[13].mxu1 }
 0x1f0   : > { %v2754_v38 = vpop.f32.mrb[14].mxu1 }
 0x1f1   : > { %v2756_v39 = vpop.f32.mrb[15].mxu1 }
 0x253   : > { %v2232_v49 = vpop.f32.mrb[0].mxu0 }
 0x254   : > { %v1262_v51 = vadd.f32 %v2232_v49, %v2176_v24  ;;  %v1256_v52 = vpop.f32.mrb[1].mxu0 }
 0x255   : > { %v1257_v53 = vadd.f32 %v1256_v52, %v1111_v25 }
 0x256   : > { %v1343_v54 = vadd.f32 %v2799_v50, %v1262_v51 }
 0x257   : > { %v1342_v55 = vadd.f32 %v2799_v50, %v1257_v53 }
 0x258   : > { %v1359_v56 = vmax.f32 %v1343_v54, 0.0 }
 0x259   : > { %v1358_v57 = vmax.f32 %v1342_v55, 0.0  ;;  %v2235_v58 = vpop.f32.mrb[2].mxu0 }
 0x25a   : > { %v1272_v60 = vadd.f32 %v2235_v58, %v2179_v26  ;;  %v1266_v61 = vpop.f32.mrb[3].mxu0 }
 0x25b   : > { %v1267_v62 = vadd.f32 %v1266_v61, %v1121_v27  ;;  %v2364_v63 = vpack.c.bf16 %v1359_v56, %v1358_v57 }
 0x25c   : > { %v1345_v0 = vadd.f32 %v2799_v50, %v1272_v60 }
 0x25d   : > { %v1344_v1 = vadd.f32 %v2799_v50, %v1267_v62  ;;  %2365 = vmatprep.subr.bf16.mxu1 %v2364_v63 }
 0x25e   : > { %v1361_v2 = vmax.f32 %v1345_v0, 0.0  ;;  %2367 = vmatpush3.bf16.msra.mxu1 %v2364_v63 }
 0x25f   : > { %v1360_v3 = vmax.f32 %v1344_v1, 0.0 }
 0x261   : > { %v2238_v4 = vpop.f32.mrb[4].mxu0  ;;  %v2368_v5 = vpack.c.bf16 %v1361_v2, %v1360_v3 }
 0x262   : > { %v1282_v6 = vadd.f32 %v2238_v4, %v2182_v28  ;;  %v1276_v7 = vpop.f32.mrb[5].mxu0 }
 0x263   : > { %v1277_v8 = vadd.f32 %v1276_v7, %v1131_v29  ;;  %2369 = vmatprep.subr.bf16.mxu1 %v2368_v5 }
 0x264   : > { %v1347_v9 = vadd.f32 %v2799_v50, %v1282_v6  ;;  %2371 = vmatpush3.bf16.msra.mxu1 %v2368_v5 }
 0x265   : > { %v1346_v10 = vadd.f32 %v2799_v50, %v1277_v8 }
 0x266   : > { %v1363_v11 = vmax.f32 %v1347_v9, 0.0 }
 0x267   : > { %v1362_v12 = vmax.f32 %v1346_v10, 0.0  ;;  %v1417_v10 = vld [vmem:[#allocation3 + $0x28] sm:$0xff] }
 0x269   : > { %v2241_v13 = vpop.f32.mrb[6].mxu0  ;;  %v2372_v14 = vpack.c.bf16 %v1363_v11, %v1362_v12 }
 0x26a   : > { %v1292_v15 = vadd.f32 %v2241_v13, %v2185_v30  ;;  %v1286_v16 = vpop.f32.mrb[7].mxu0  ;;  %v1419_v13 = vld [vmem:[#allocation3 + $0x38] sm:$0xff] }
 0x26b   : > { %v1287_v17 = vadd.f32 %v1286_v16, %v1141_v31  ;;  %2373 = vmatprep.subr.bf16.mxu1 %v2372_v14 }
 0x26c   : > { %v1349_v18 = vadd.f32 %v2799_v50, %v1292_v15  ;;  %2375 = vmatpush3.bf16.msra.mxu1 %v2372_v14  ;;  %v1418_v14 = vld [vmem:[#allocation3 + $0x30] sm:$0xff] }
 0x26d   : > { %v1348_v19 = vadd.f32 %v2799_v50, %v1287_v17 }
 0x26e   : > { %v1365_v20 = vmax.f32 %v1349_v18, 0.0 }
 0x26f   : > { %v1364_v21 = vmax.f32 %v1348_v19, 0.0  ;;  %v1563_v19 = vld [vmem:[%s2965_s10] sm:$0xff] (!%p2012_p6) }
 0x271   : > { %v2244_v22 = vpop.f32.mrb[8].mxu0  ;;  %v2376_v23 = vpack.c.bf16 %v1365_v20, %v1364_v21  ;;  %v1564_v20 = vld [vmem:[%s2965_s10 + $0x8] sm:$0xff] (!%p2012_p6)  ;;  %v1565_v21 = vld [vmem:[%s2965_s10 + $0x10] sm:$0xff] (!%p2012_p6) }
 0x272   : > { %v1302_v24 = vadd.f32 %v2244_v22, %v2742_v32  ;;  %v1296_v25 = vpop.f32.mrb[9].mxu0  ;;  %v2396_v22 = vpack.c.bf16 (!%p2012_p6), %v1564_v20, %v1563_v19 }
 0x273   : > { %v1297_v26 = vadd.f32 %v1296_v25, %v2744_v33  ;;  %2377 = vmatprep.subr.bf16.mxu1 %v2376_v23  ;;  %v1546_v25 = vld [vmem:[%s2955_s0] sm:$0xff] (!%p2012_p6) }
 0x274   : > { %v1351_v27 = vadd.f32 %v2799_v50, %v1302_v24  ;;  %2379 = vmatpush3.bf16.msra.mxu1 %v2376_v23  ;;  %v1566_v23 = vld [vmem:[%s2965_s10 + $0x18] sm:$0xff] (!%p2012_p6)  ;;  %v1554_v24 = vld [vmem:[%s2964_s9] sm:$0xff] (!%p2012_p6)  ;;  %2320 = vmatprep.mubr.msk.f32.mxu0 (!%p2012_p6), %vm1696_vm13, %v1546_v25 }
 0x275   : > { %v1350_v28 = vadd.f32 %v2799_v50, %v1297_v26  ;;  %v2400_v26 = vpack.c.bf16 (!%p2012_p6), %v1566_v23, %v1565_v21  ;;  %2318 = vmatprep.subr.mxu0 (!%p2012_p6), %v1554_v24 }
 0x276   : > { %v1367_v29 = vmax.f32 %v1351_v27, 0.0  ;;  %2319 = vmatpush3.msra.mxu0 (!%p2012_p6), %v1554_v24 }
 0x277   : > { %v1366_v30 = vmax.f32 %v1350_v28, 0.0  ;;  %v1547_v28 = vld [vmem:[%s2955_s0 + $0x8] sm:$0xff] (!%p2012_p6) }
 0x278   : > { %2321 = vmatmul.mubr.msk.f32.vlgmr.msra.gmra.mrb[0].mxu0 (!%p2012_p6), %vm1696_vm13, %v1547_v28 }
 0x279   : > { %v2247_v31 = vpop.f32.mrb[10].mxu0  ;;  %v2380_v40 = vpack.c.bf16 %v1367_v29, %v1366_v30  ;;  %v1548_v29 = vld [vmem:[%s2955_s0 + $0x10] sm:$0xff] (!%p2012_p6)  ;;  %v1549_v30 = vld [vmem:[%s2955_s0 + $0x18] sm:$0xff] (!%p2012_p6) }
 0x27a   : > { %v1312_v49 = vadd.f32 %v2247_v31, %v2746_v34  ;;  %v1306_v51 = vpop.f32.mrb[11].mxu0  ;;  %2323 = vmatprep.mubr.msk.f32.mxu0 (!%p2012_p6), %vm1696_vm13, %v1548_v29  ;;  %v1550_v31 = vld [vmem:[%s2955_s0 + $0x20] sm:$0xff] (!%p2012_p6) }
 0x27b   : > { %v1307_v52 = vadd.f32 %v1306_v51, %v2748_v35  ;;  %2381 = vmatprep.subr.bf16.mxu1 %v2380_v40  ;;  %v1551_v51 = vld [vmem:[%s2955_s0 + $0x28] sm:$0xff] (!%p2012_p6) }
 0x27c   : > { %v1353_v32 = vadd.f32 %v2799_v50, %v1312_v49  ;;  %2383 = vmatpush3.bf16.msra.mxu1 %v2380_v40  ;;  %2324 = vmatmul.mubr.msk.f32.gmra.mrb[2].mxu0 (!%p2012_p6), %vm1696_vm13, %v1549_v30 }
 0x27d   : > { %v1352_v33 = vadd.f32 %v2799_v50, %v1307_v52  ;;  %2326 = vmatprep.mubr.msk.f32.mxu0 (!%p2012_p6), %vm1696_vm13, %v1550_v31  ;;  %v1552_v52 = vld [vmem:[%s2955_s0 + $0x30] sm:$0xff] (!%p2012_p6) }
 0x27e   : > { %v1369_v53 = vmax.f32 %v1353_v32, 0.0 }
 0x27f   : > { %v1368_v54 = vmax.f32 %v1352_v33, 0.0 }
 0x280   : > { %2327 = vmatmul.mubr.msk.f32.gmra.mrb[4].mxu0 (!%p2012_p6), %vm1696_vm13, %v1551_v51 }
 0x281   : > { %v2250_v55 = vpop.f32.mrb[12].mxu0  ;;  %v2384_v56 = vpack.c.bf16 %v1369_v53, %v1368_v54  ;;  %2329 = vmatprep.mubr.msk.f32.mxu0 (!%p2012_p6), %vm1696_vm13, %v1552_v52  ;;  %v1553_v53 = vld [vmem:[%s2955_s0 + $0x38] sm:$0xff] (!%p2012_p6) }
 0x282   : > { %v1322_v57 = vadd.f32 %v2250_v55, %v2750_v36  ;;  %v1316_v58 = vpop.f32.mrb[13].mxu0 }
 0x283   : > { %v1317_v60 = vadd.f32 %v1316_v58, %v2752_v37  ;;  %2385 = vmatprep.subr.bf16.mxu1 %v2384_v56 }
 0x284   : > { %v1355_v34 = vadd.f32 %v2799_v50, %v1322_v57  ;;  %2387 = vmatpush3.bf16.msra.mxu1 %v2384_v56  ;;  %2330 = vmatmul.mubr.msk.f32.gmra.mrb[6].mxu0 (!%p2012_p6), %vm1696_vm13, %v1553_v53 }
 0x285   : > { %v1354_v35 = vadd.f32 %v2799_v50, %v1317_v60 }
 0x286   : > { %v1371_v61 = vmax.f32 %v1355_v34, 0.0 }
 0x287   : > { %v1370_v62 = vmax.f32 %v1354_v35, 0.0 }
 0x289   : > { %v2253_v63 = vpop.f32.mrb[14].mxu0  ;;  %v2388_v0 = vpack.c.bf16 %v1371_v61, %v1370_v62  ;;  %v2029_v61 = vld [vmem:[%s2966_s11] ss:$0 sm:$0xff] (!%p2012_p6) }
 0x28a   : > { %v1332_v1 = vadd.f32 %v2253_v63, %v2754_v38  ;;  %v1326_v2 = vpop.f32.mrb[15].mxu0  ;;  %v1413_v38 = vld [vmem:[#allocation3 + $0x8] sm:$0xff] }
 0x28b   : > { %v1327_v3 = vadd.f32 %v1326_v2, %v2756_v39  ;;  %2389 = vmatprep.subr.bf16.mxu1 %v2388_v0  ;;  %v1412_v39 = vld [vmem:[#allocation3] sm:$0xff] }
 0x28c   : > { %v1357_v36 = vadd.f32 %v2799_v50, %v1332_v1  ;;  %2391 = vmatpush3.bf16.msra.mxu1 %v2388_v0 }
 0x28d   : > { %v1356_v37 = vadd.f32 %v2799_v50, %v1327_v3  ;;  %v1415_v50 = vld [vmem:[#allocation3 + $0x18] sm:$0xff] }
 0x28e   : > { %v1373_v4 = vmax.f32 %v1357_v36, 0.0 }
 0x28f   : > { %v1372_v5 = vmax.f32 %v1356_v37, 0.0 }
 0x291   : > { %v2392_v6 = vpack.c.bf16 %v1373_v4, %v1372_v5 }
 0x293   : > { %2393 = vmatprep.subr.bf16.mxu1 %v2392_v6 }
 0x294   : > { %2395 = vmatpush3.bf16.msra.mxu1 %v2392_v6 }
 0x295   : > { %2397 = vmatprep.subr.bf16.mxu1 (!%p2012_p6), %v2396_v22 }
 0x297   : > { %2287 = vmatmul.mubr.msk.f32.vlgmr.msra.gmra.mrb[16].mxu1 %vm1389_vm5, %v2451_v59 }
 0x298   : > { %2289 = vmatprep.mubr.msk.f32.mxu1 %vm1390_vm6, %v2451_v59  ;;  %2399 = vmatpush3.bf16.msra.mxu1 (!%p2012_p6), %v2396_v22 }
 0x299   : > { %2401 = vmatprep.subr.bf16.mxu1 (!%p2012_p6), %v2400_v26 }
 0x29b   : > { %2290 = vmatmul.mubr.msk.f32.gmra.mrb[18].mxu1 %vm1391_vm7, %v2451_v59 }
 0x29c   : > { %2292 = vmatprep.mubr.msk.f32.mxu1 %vm1392_vm8, %v2451_v59  ;;  %2403 = vmatpush3.bf16.msra.mxu1 (!%p2012_p6), %v2400_v26 }
 0x29f   : > { %2293 = vmatmul.mubr.msk.f32.gmra.mrb[20].mxu1 %vm1393_vm9, %v2451_v59 }
 0x2a0   : > { %2295 = vmatprep.mubr.msk.f32.mxu1 %vm1394_vm10, %v2451_v59 }
 0x2a3   : > { %2296 = vmatmul.mubr.msk.f32.gmra.mrb[22].mxu1 %vm1395_vm11, %v2451_v59  ;;  %v1416_v59 = vld [vmem:[#allocation3 + $0x20] sm:$0xff] }
 0x34b   : > { %v2322_v57 = vpop.f32.mrb[0].mxu0 (!%p2012_p6) }
 0x34c   : > { %v1787_v58 = vpop.f32.mrb[1].mxu0 (!%p2012_p6) }
 0x34f   : > { %v2325_v60 = vpop.f32.mrb[2].mxu0 (!%p2012_p6) }
 0x350   : > { %v1797_v34 = vpop.f32.mrb[3].mxu0 (!%p2012_p6) }
 0x353   : > { %v2328_v1 = vpop.f32.mrb[4].mxu0 (!%p2012_p6) }
 0x354   : > { %v1807_v3 = vpop.f32.mrb[5].mxu0 (!%p2012_p6) }
 0x36a   : > { %v2288_v42 = vpop.f32.mrb[16].mxu1 }
 0x36b   : > { %v1526_v43 = vadd.f32 %v2288_v42, %v1413_v38  ;;  %v1486_v44 = vpop.f32.mrb[17].mxu1  ;;  %v2331_v42 = vpop.f32.mrb[6].mxu0 (!%p2012_p6) }
 0x36c   : > { %v1525_v45 = vadd.f32 %v1486_v44, %v1412_v39  ;;  %v1817_v44 = vpop.f32.mrb[7].mxu0 (!%p2012_p6) }
 0x36d   : > { %1535 = vst.msk [vmem:[#allocation3 + $0x8] sm:$0xff] %vm1533_vm12, %v1526_v43 }
 0x36e   : > { %1534 = vst.msk [vmem:[#allocation3] sm:$0xff] %vm1533_vm12, %v1525_v45  ;;  %v2291_v47 = vpop.f32.mrb[18].mxu1 }
 0x36f   : > { %v1528_v7 = vadd.f32 %v2291_v47, %v1415_v50  ;;  %v1496_v8 = vpop.f32.mrb[19].mxu1 }
 0x370   : > { %v1527_v9 = vadd.f32 %v1496_v8, %v1414_v46 }
 0x371   : > { %1537 = vst.msk [vmem:[#allocation3 + $0x18] sm:$0xff] %vm1533_vm12, %v1528_v7 }
 0x372   : > { %1536 = vst.msk [vmem:[#allocation3 + $0x10] sm:$0xff] %vm1533_vm12, %v1527_v9  ;;  %v2294_v41 = vpop.f32.mrb[20].mxu1 }
 0x373   : > { %v1530_v48 = vadd.f32 %v2294_v41, %v1417_v10  ;;  %v1506_v11 = vpop.f32.mrb[21].mxu1 }
 0x374   : > { %v1529_v12 = vadd.f32 %v1506_v11, %v1416_v59  ;;  %1545 = sbr.rel (%p2012_p6) target bundleno = 1119 (0x45f), region = 76  ;;  %v1556_v40 = vld [vmem:[#allocation3 + $0x8] sm:$0xff] (!%p2012_p6) }
 0x375   : > { %1539 = vst.msk [vmem:[#allocation3 + $0x28] sm:$0xff] %vm1533_vm12, %v1530_v48  ;;  %v1555_v27 = vld [vmem:[#allocation3] sm:$0xff] (!%p2012_p6) }
 0x376   : > { %1538 = vst.msk [vmem:[#allocation3 + $0x20] sm:$0xff] %vm1533_vm12, %v1529_v12  ;;  %v2297_v15 = vpop.f32.mrb[22].mxu1  ;;  %2306 = vmatprep.mubr.msk.f32.mxu1 (!%p2012_p6), %vm1533_vm12, %v1555_v27 }
 0x377   : > { %v1532_v16 = vadd.f32 %v2297_v15, %v1419_v13  ;;  %v1516_v17 = vpop.f32.mrb[23].mxu1  ;;  %2307 = vmatmul.mubr.msk.f32.vlgmr.msra.gmra.mrb[0].mxu1 (!%p2012_p6), %vm1533_vm12, %v1556_v40 }
 0x378   : > { %v1531_v18 = vadd.f32 %v1516_v17, %v1418_v14  ;;  %v1558_v32 = vld [vmem:[#allocation3 + $0x18] sm:$0xff] (!%p2012_p6) }
 0x379   : > { %1541 = vst.msk [vmem:[#allocation3 + $0x38] sm:$0xff] %vm1533_vm12, %v1532_v16  ;;  %v1557_v49 = vld [vmem:[#allocation3 + $0x10] sm:$0xff] (!%p2012_p6) }
 0x37a   : > { %1540 = vst.msk [vmem:[#allocation3 + $0x30] sm:$0xff] %vm1533_vm12, %v1531_v18  ;;  %2309 = vmatprep.mubr.msk.f32.mxu1 (!%p2012_p6), %vm1533_vm12, %v1557_v49 }
 0x37b   : > { %2310 = vmatmul.mubr.msk.f32.gmra.mrb[2].mxu1 %vm1533_vm12, %v1558_v32 }
 0x37c   : > { %v1560_v54 = vld [vmem:[#allocation3 + $0x28] sm:$0xff] }
 0x37d   : > { %v1559_v33 = vld [vmem:[#allocation3 + $0x20] sm:$0xff] }
 0x37e   : > { %2312 = vmatprep.mubr.msk.f32.mxu1 %vm1533_vm12, %v1559_v33 }
 0x37f   : > { %2313 = vmatmul.mubr.msk.f32.gmra.mrb[4].mxu1 %vm1533_vm12, %v1560_v54 }
 0x380   : > { %v1562_v56 = vld [vmem:[#allocation3 + $0x38] sm:$0xff] }
 0x381   : > { %v1561_v55 = vld [vmem:[#allocation3 + $0x30] sm:$0xff] }
 0x382   : > { %2315 = vmatprep.mubr.msk.f32.mxu1 %vm1533_vm12, %v1561_v55 }
 0x383   : > { %2316 = vmatmul.mubr.msk.f32.gmra.mrb[6].mxu1 %vm1533_vm12, %v1562_v56 }
 0x44a   : > { %v2308_v35 = vpop.f32.mrb[0].mxu1 }
 0x44b   : > { %v1793_v62 = vadd.f32 %v2322_v57, %v2308_v35  ;;  %v1657_v63 = vpop.f32.mrb[1].mxu1 }
 0x44c   : > { %v1788_v0 = vadd.f32 %v1787_v58, %v1657_v63 }
 0x44d   : > { %v1834_v2 = vadd.f32 %v2029_v61, %v1793_v62 }
 0x44e   : > { %v1833_v36 = vadd.f32 %v2029_v61, %v1788_v0  ;;  %v2311_v37 = vpop.f32.mrb[2].mxu1 }
 0x44f   : > { %v1842_v4 = vmax.f32 %v1834_v2, 0.0  ;;  %v1803_v5 = vadd.f32 %v2325_v60, %v2311_v37  ;;  %v1667_v6 = vpop.f32.mrb[3].mxu1 }
 0x450   : > { %v1841_v38 = vmax.f32 %v1833_v36, 0.0  ;;  %v1798_v39 = vadd.f32 %v1797_v34, %v1667_v6 }
 0x451   : > { %1850 = vst.msk [vmem:[%s2967_s12 + $0x8] sm:$0xff] %vm1696_vm13, %v1842_v4  ;;  %v1836_v43 = vadd.f32 %v2029_v61, %v1803_v5 }
 0x452   : > { %1849 = vst.msk [vmem:[%s2967_s12] sm:$0xff] %vm1696_vm13, %v1841_v38  ;;  %v1835_v45 = vadd.f32 %v2029_v61, %v1798_v39  ;;  %v2314_v50 = vpop.f32.mrb[4].mxu1 }
 0x453   : > { %v1844_v46 = vmax.f32 %v1836_v43, 0.0  ;;  %v1813_v47 = vadd.f32 %v2328_v1, %v2314_v50  ;;  %v1677_v7 = vpop.f32.mrb[5].mxu1 }
 0x454   : > { %v1843_v8 = vmax.f32 %v1835_v45, 0.0  ;;  %v1808_v9 = vadd.f32 %v1807_v3, %v1677_v7 }
 0x455   : > { %1852 = vst.msk [vmem:[%s2967_s12 + $0x18] sm:$0xff] %vm1696_vm13, %v1844_v46  ;;  %v1838_v10 = vadd.f32 %v2029_v61, %v1813_v47 }
 0x456   : > { %1851 = vst.msk [vmem:[%s2967_s12 + $0x10] sm:$0xff] %vm1696_vm13, %v1843_v8  ;;  %v1837_v59 = vadd.f32 %v2029_v61, %v1808_v9  ;;  %v2317_v41 = vpop.f32.mrb[6].mxu1 }
 0x457   : > { %v1846_v48 = vmax.f32 %v1838_v10, 0.0  ;;  %v1823_v11 = vadd.f32 %v2331_v42, %v2317_v41  ;;  %v1687_v12 = vpop.f32.mrb[7].mxu1 }
 0x458   : > { %v1845_v13 = vmax.f32 %v1837_v59, 0.0  ;;  %v1818_v14 = vadd.f32 %v1817_v44, %v1687_v12 }
 0x459   : > { %1854 = vst.msk [vmem:[%s2967_s12 + $0x28] sm:$0xff] %vm1696_vm13, %v1846_v48  ;;  %v1840_v15 = vadd.f32 %v2029_v61, %v1823_v11 }
 0x45a   : > { %1853 = vst.msk [vmem:[%s2967_s12 + $0x20] sm:$0xff] %vm1696_vm13, %v1845_v13  ;;  %v1839_v16 = vadd.f32 %v2029_v61, %v1818_v14 }
 0x45b   : > { %v1848_v17 = vmax.f32 %v1840_v15, 0.0 }
 0x45c   : > { %v1847_v18 = vmax.f32 %v1839_v16, 0.0 }
 0x45d   : > { %1856 = vst.msk [vmem:[%s2967_s12 + $0x38] sm:$0xff] %vm1696_vm13, %v1848_v17 }
 0x45e   : > { %1855 = vst.msk [vmem:[%s2967_s12 + $0x30] sm:$0xff] %vm1696_vm13, %v1847_v18 }
 0x45f PF: > { %s22_s21 = sadd.s32 1, %s2447_s21  }
 0x460   : > { %p19_p7 = scmp.ge.s32.totalorder %s22_s21, 5  }
 0x462   :  { %21 = sbr.rel (!%p19_p7) target bundleno = 1 (0x1), region = 111 }

</bundles_post_ra>
